<compile_context>
chip_gen: v5e
topology: v5e:2x2
jax: 0.10.0
libtpu: 0.0.40
codegen_flags: <defaults>
</compile_context>

<pallas_src>
import jax
import jax.numpy as jnp
from jax.experimental import pallas as pl
from jax.experimental.pallas import tpu as pltpu


def _round_up(x: int, m: int) -> int:
    return ((x + m - 1) // m) * m


def _embed_gather_kernel(ids_smem, tts_ref, word_hbm, tt_ref, out_ref,
                         gbuf, sem):
    # ids_smem : SMEM (n_pad,) int32            (scalar-prefetched token ids)
    # tts_ref  : VMEM (row_tile, 1) int32       (token-type ids for this tile)
    # word_hbm : HBM  (V, D)                    (raw ref, memory_space=pl.ANY)
    # tt_ref   : VMEM (3, D)                    (grid-invariant)
    # out_ref  : VMEM (row_tile, D)
    # gbuf     : VMEM (row_tile, D) scratch     (gathered word rows)
    # sem      : DMA semaphore array (1,)
    rt, _ = out_ref.shape
    base = pl.program_id(0) * rt

    # 1) Issue one row DMA per token: word_table[id] (HBM) -> gather buffer.
    @pl.loop(0, rt)
    def _issue(r):
        tok = ids_smem[base + r]
        pltpu.make_async_copy(
            word_hbm.at[pl.ds(tok, 1), :],
            gbuf.at[pl.ds(r, 1), :],
            sem.at[0],
        ).start()

    # 2) Token-type embedding (only 3 rows -> two selects) while the row DMAs
    #    are in flight.
    tts = tts_ref[...]                                    # (rt, 1) int32
    tt = tt_ref[...].astype(jnp.float32)                  # (3, D)
    tt_emb = jnp.where(tts == 1, tt[1:2, :],
                       jnp.where(tts == 2, tt[2:3, :], tt[0:1, :]))

    # 3) Drain all row DMAs of this tile (same-sized descriptors, same sem).
    @pl.loop(0, rt)
    def _drain(r):
        pltpu.make_async_copy(
            word_hbm.at[pl.ds(0, 1), :],
            gbuf.at[pl.ds(r, 1), :],
            sem.at[0],
        ).wait()

    # 4) Lane/sublane-dense add, single unmasked store of the (rt, D) slab.
    out_ref[...] = (gbuf[...].astype(jnp.float32) + tt_emb).astype(out_ref.dtype)


def _vmem_limit_bytes(rt, d, word_dt, tt_dt, out_dt):
    wb = jnp.dtype(word_dt).itemsize
    tb = jnp.dtype(tt_dt).itemsize
    ob = jnp.dtype(out_dt).itemsize
    b = 2 * rt * d * ob          # double-buffered output slabs
    b += 2 * rt * 128 * 4        # (rt, 1) int32 token-type blocks (lane-padded), x2 buffers
    b += 2 * 8 * d * tb          # (3, D) token-type table (sublane-padded), x2 buffers
    b += rt * d * wb             # gather scratch
    b += 4 << 20                 # slack for compiler internals
    return int(min(max(b, 8 << 20), 100 << 20))


def wrap_embedding(input_ids, token_type_ids, word_table, tt_table, *,
                   out_dtype=None, row_tile=256):
    """Pallas implementation of WrapEmbedding.forward -> (B, S, D).

    out_dtype: pass jnp.bfloat16 if downstream consumes bf16 activations to
    halve the output HBM writeback (accumulation stays in f32).
    """
    B, S = input_ids.shape
    V, D = word_table.shape
    T = tt_table.shape[0]
    if out_dtype is None:
        out_dtype = jnp.promote_types(word_table.dtype, tt_table.dtype)

    # Flatten (B, S) -> rows; pad the row count to a multiple of the tile.
    n = B * S
    rt = min(row_tile, _round_up(n, 8))
    # Keep the "parallel" row axis at >= 2 blocks so v7x's 2 TensorCores both work.
    if _round_up(n, rt) // rt < 2 and rt > 8:
        rt = max(8, _round_up(pl.cdiv(n, 2), 8))
    n_pad = _round_up(n, rt)

    # Clamp ids so the data-dependent row DMAs can never run out of bounds.
    # (PyTorch nn.Embedding raises on OOB ids; here they are clamped instead.)
    ids_flat = jnp.clip(input_ids.reshape(n).astype(jnp.int32), 0, V - 1)
    tts_flat = jnp.clip(token_type_ids.reshape(n, 1).astype(jnp.int32), 0, T - 1)
    if n_pad != n:
        ids_flat = jnp.pad(ids_flat, (0, n_pad - n))
        tts_flat = jnp.pad(tts_flat, ((0, n_pad - n), (0, 0)))

    grid_spec = pltpu.PrefetchScalarGridSpec(
        num_scalar_prefetch=1,
        grid=(n_pad // rt,),
        in_specs=[
            pl.BlockSpec((rt, 1), lambda i, ids: (i, 0)),   # token_type_ids tile
            pl.BlockSpec(memory_space=pl.ANY),              # word table stays in HBM
            pl.BlockSpec((T, D), lambda i, ids: (0, 0)),    # token-type table (invariant)
        ],
        out_specs=pl.BlockSpec((rt, D), lambda i, ids: (i, 0)),
        scratch_shapes=[
            pltpu.VMEM((rt, D), word_table.dtype),          # gathered word rows
            pltpu.SemaphoreType.DMA((1,)),                  # row-gather DMA semaphore
        ],
    )

    out_flat = pl.pallas_call(
        _embed_gather_kernel,
        out_shape=jax.ShapeDtypeStruct((n_pad, D), out_dtype),
        grid_spec=grid_spec,
        compiler_params=pltpu.CompilerParams(
            dimension_semantics=("parallel",),
            vmem_limit_bytes=_vmem_limit_bytes(
                rt, D, word_table.dtype, tt_table.dtype, out_dtype),
        ),
    )(ids_flat, tts_flat, word_table, tt_table)

    return out_flat[:n].reshape(B, S, D)


if __name__ == "__main__":
    # Small, deterministic synthetic config (stand-in for MBartConfig.d_model).
    B, S = 2, 8            # batch, sequence length
    V, D = 64, 128         # vocab size, d_model
    NUM_TOKEN_TYPES = 3    # nn.Embedding(3, d_model) in the module

    key = jax.random.PRNGKey(0)
    k_word, k_tt, k_ids, k_tts = jax.random.split(key, 4)

    word_table = jax.random.normal(k_word, (V, D), dtype=jnp.float32) * 0.02
    tt_table = jax.random.normal(k_tt, (NUM_TOKEN_TYPES, D), dtype=jnp.float32) * 0.02

    input_ids = jax.random.randint(k_ids, (B, S), 0, V, dtype=jnp.int32)
    token_type_ids = jax.random.randint(k_tts, (B, S), 0, NUM_TOKEN_TYPES, dtype=jnp.int32)

    out = wrap_embedding(input_ids, token_type_ids, word_table, tt_table)
    out = jax.block_until_ready(out)

    # Pure-JAX reference.  The kernel does a true gather + a single f32 add,
    # so the result should match the reference essentially exactly.
    expected = word_table[input_ids] + tt_table[token_type_ids]
    assert out.shape == (B, S, D), out.shape
    assert jnp.allclose(out, expected, atol=1e-6, rtol=0), "mismatch vs reference"

    print("KERNEL_OK")
</pallas_src>

<mosaic_0001>
module attributes {stable_mosaic.version = 11 : i64} {
  func.func @_embed_gather_kernel(%arg0: i32, %arg1: memref<16xi32, #tpu.memory_space<smem>>, %arg2: memref<8x1xi32, #tpu.memory_space<vmem>>, %arg3: memref<64x128xf32, #tpu.memory_space<any>>, %arg4: memref<3x128xf32, #tpu.memory_space<vmem>>, %arg5: memref<8x128xf32, #tpu.memory_space<vmem>>, %arg6: memref<8x128xf32, #tpu.memory_space<vmem>>, %arg7: memref<1x!tpu.dma_semaphore, #tpu.memory_space<semaphore_mem>>) attributes {dimension_semantics = [#tpu.dimension_semantics<parallel>], iteration_bounds = array<i64: 2>, scalar_prefetch = 1 : i64, scratch_operands = 2 : i64, tpu.core_type = #tpu.core_type<tc>, window_params = [{transform_indices = @transform_0, window_bounds = array<i64: 8, 1>}, {}, {pipeline_mode = #tpu.pipeline_mode<synchronous>, transform_indices = @transform_2, window_bounds = array<i64: 3, 128>}, {transform_indices = @transform_3, window_bounds = array<i64: 8, 128>}]} {
    %c8_i32 = arith.constant 8 : i32
    %0 = arith.muli %arg0, %c8_i32 : i32
    %c0_i32 = arith.constant 0 : i32
    %c8_i32_0 = arith.constant 8 : i32
    %1 = arith.addi %c0_i32, %c8_i32_0 : i32
    %c1_i32 = arith.constant 1 : i32
    scf.for %arg8 = %c0_i32 to %1 step %c1_i32  : i32 {
      %c1_i32_14 = arith.constant 1 : i32
      %27 = arith.muli %arg8, %c1_i32_14 : i32
      %c0_i32_15 = arith.constant 0 : i32
      %28 = arith.addi %c0_i32_15, %27 : i32
      %29 = arith.addi %0, %28 : i32
      %30 = arith.index_cast %29 : i32 to index
      %31 = memref.load %arg1[%30] : memref<16xi32, #tpu.memory_space<smem>>
      %c0_i32_16 = arith.constant 0 : i32
      %c0_i32_17 = arith.constant 0 : i32
      %32 = tpu.memref_slice %arg3[%31, %c0_i32_17] : memref<64x128xf32, #tpu.memory_space<any>> -> memref<1x128xf32, #tpu.memory_space<any>>
      %c0_i32_18 = arith.constant 0 : i32
      %33 = tpu.memref_slice %arg6[%28, %c0_i32_18] : memref<8x128xf32, #tpu.memory_space<vmem>> -> memref<1x128xf32, #tpu.memory_space<vmem>>
      %34 = tpu.memref_slice %arg7[%c0_i32_16] : memref<1x!tpu.dma_semaphore, #tpu.memory_space<semaphore_mem>> -> memref<1x!tpu.dma_semaphore, #tpu.memory_space<semaphore_mem>>
      %35 = tpu.memref_squeeze %34 : memref<1x!tpu.dma_semaphore, #tpu.memory_space<semaphore_mem>> -> memref<!tpu.dma_semaphore, #tpu.memory_space<semaphore_mem>>
      tpu.enqueue_dma source(%32 : memref<1x128xf32, #tpu.memory_space<any>>) target(%33 : memref<1x128xf32, #tpu.memory_space<vmem>>) target_semaphore(%35 : memref<!tpu.dma_semaphore, #tpu.memory_space<semaphore_mem>>)
    }
    %c8_i32_1 = arith.constant 8 : i32
    %c0 = arith.constant 0 : index
    %c0_2 = arith.constant 0 : index
    %2 = vector.load %arg2[%c0, %c0_2] : memref<8x1xi32, #tpu.memory_space<vmem>>, vector<8x1xi32>
    %c0_3 = arith.constant 0 : index
    %c0_4 = arith.constant 0 : index
    %3 = vector.load %arg4[%c0_3, %c0_4] : memref<3x128xf32, #tpu.memory_space<vmem>>, vector<3x128xf32>
    %c1_i32_5 = arith.constant 1 : i32
    %4 = vector.broadcast %c1_i32_5 : i32 to vector<8x1xi32>
    %5 = arith.cmpi eq, %2, %4 : vector<8x1xi32>
    %6 = vector.extract_strided_slice %3 {offsets = [1, 0], sizes = [1, 128], strides = [1, 1]} : vector<3x128xf32> to vector<1x128xf32>
    %c2_i32 = arith.constant 2 : i32
    %7 = vector.broadcast %c2_i32 : i32 to vector<8x1xi32>
    %8 = arith.cmpi eq, %2, %7 : vector<8x1xi32>
    %9 = vector.extract_strided_slice %3 {offsets = [2, 0], sizes = [1, 128], strides = [1, 1]} : vector<3x128xf32> to vector<1x128xf32>
    %10 = vector.extract_strided_slice %3 {offsets = [0, 0], sizes = [1, 128], strides = [1, 1]} : vector<3x128xf32> to vector<1x128xf32>
    %11 = vector.shape_cast %8 : vector<8x1xi1> to vector<8x1xi1>
    %12 = vector.broadcast %11 : vector<8x1xi1> to vector<8x128xi1>
    %13 = vector.shape_cast %9 : vector<1x128xf32> to vector<1x128xf32>
    %14 = vector.broadcast %13 : vector<1x128xf32> to vector<8x128xf32>
    %15 = vector.shape_cast %10 : vector<1x128xf32> to vector<1x128xf32>
    %16 = vector.broadcast %15 : vector<1x128xf32> to vector<8x128xf32>
    %17 = arith.select %12, %14, %16 : vector<8x128xi1>, vector<8x128xf32>
    %18 = vector.shape_cast %5 : vector<8x1xi1> to vector<8x1xi1>
    %19 = vector.broadcast %18 : vector<8x1xi1> to vector<8x128xi1>
    %20 = vector.shape_cast %6 : vector<1x128xf32> to vector<1x128xf32>
    %21 = vector.broadcast %20 : vector<1x128xf32> to vector<8x128xf32>
    %22 = arith.select %19, %21, %17 : vector<8x128xi1>, vector<8x128xf32>
    %c0_i32_6 = arith.constant 0 : i32
    %c8_i32_7 = arith.constant 8 : i32
    %23 = arith.addi %c0_i32_6, %c8_i32_7 : i32
    %c1_i32_8 = arith.constant 1 : i32
    scf.for %arg8 = %c0_i32_6 to %23 step %c1_i32_8  : i32 {
      %c1_i32_14 = arith.constant 1 : i32
      %27 = arith.muli %arg8, %c1_i32_14 : i32
      %c0_i32_15 = arith.constant 0 : i32
      %28 = arith.addi %c0_i32_15, %27 : i32
      %c0_i32_16 = arith.constant 0 : i32
      %c0_i32_17 = arith.constant 0 : i32
      %c0_i32_18 = arith.constant 0 : i32
      %29 = tpu.memref_slice %arg3[%c0_i32_17, %c0_i32_18] : memref<64x128xf32, #tpu.memory_space<any>> -> memref<1x128xf32, #tpu.memory_space<any>>
      %c0_i32_19 = arith.constant 0 : i32
      %30 = tpu.memref_slice %arg6[%28, %c0_i32_19] : memref<8x128xf32, #tpu.memory_space<vmem>> -> memref<1x128xf32, #tpu.memory_space<vmem>>
      %31 = tpu.memref_slice %arg7[%c0_i32_16] : memref<1x!tpu.dma_semaphore, #tpu.memory_space<semaphore_mem>> -> memref<1x!tpu.dma_semaphore, #tpu.memory_space<semaphore_mem>>
      %32 = tpu.memref_squeeze %31 : memref<1x!tpu.dma_semaphore, #tpu.memory_space<semaphore_mem>> -> memref<!tpu.dma_semaphore, #tpu.memory_space<semaphore_mem>>
      tpu.wait_dma2 semaphore(%32 : memref<!tpu.dma_semaphore, #tpu.memory_space<semaphore_mem>>) src(%29 : memref<1x128xf32, #tpu.memory_space<any>>) dst(%30 : memref<1x128xf32, #tpu.memory_space<vmem>>)
    }
    %c8_i32_9 = arith.constant 8 : i32
    %c0_10 = arith.constant 0 : index
    %c0_11 = arith.constant 0 : index
    %24 = vector.load %arg6[%c0_10, %c0_11] : memref<8x128xf32, #tpu.memory_space<vmem>>, vector<8x128xf32>
    %25 = arith.addf %24, %22 : vector<8x128xf32>
    %c0_12 = arith.constant 0 : index
    %c0_13 = arith.constant 0 : index
    %26 = vector.load %arg5[%c0_12, %c0_13] : memref<8x128xf32, #tpu.memory_space<vmem>>, vector<8x128xf32>
    tpu.vector_store %arg5[%c0_12, %c0_13], %25 {strides = array<i32>} : memref<8x128xf32, #tpu.memory_space<vmem>>, vector<8x128xf32>,
    return
  }
  func.func @transform_0(%arg0: i32, %arg1: memref<16xi32, #tpu.memory_space<smem>>) -> (i32, i32) {
    %c0_i32 = arith.constant 0 : i32
    %c0_i32_0 = arith.constant 0 : i32
    return %arg0, %c0_i32 : i32, i32
  }
  func.func @transform_2(%arg0: i32, %arg1: memref<16xi32, #tpu.memory_space<smem>>) -> (i32, i32) {
    %c0_i32 = arith.constant 0 : i32
    %c0_i32_0 = arith.constant 0 : i32
    %c0_i32_1 = arith.constant 0 : i32
    return %c0_i32, %c0_i32_0 : i32, i32
  }
  func.func @transform_3(%arg0: i32, %arg1: memref<16xi32, #tpu.memory_space<smem>>) -> (i32, i32) {
    %c0_i32 = arith.constant 0 : i32
    %c0_i32_0 = arith.constant 0 : i32
    return %arg0, %c0_i32 : i32, i32
  }
}

</mosaic_0001>

<bundles_post_ra>
// kernel: tpu_custom_call.1
= control target key start
LH: loop header
LB: loop body
LE: loop exit
PB: predicated region body
PF: predicated region fallthrough
CT: control target
= control target key end

     0   :  { %s487_s18 = smov [#allocation5]   ;;  %s643_s0 = inlined_call_operand.vmem [shape: s32[16], index: 0, kind: input, shape index: {}]   ;;  %s644_s1 = inlined_call_operand.vmem [shape: s32[16,1], index: 1, kind: input, shape index: {}]   ;;  %s645_s2 = inlined_call_operand.hbm [shape: f32[64,128], index: 2, kind: input, shape index: {}]   ;;  %s646_s3 = inlined_call_operand.vmem [shape: f32[3,128], index: 3, kind: input, shape index: {}]   ;;  %s647_s4 = inlined_call_operand.hbm [shape: f32[16,128], index: 4, kind: output, shape index: {}]  }
   0x1   :  { %s10_s17 = sshll.u32 %s643_s0, 4  ;;  %s11_s17 = int_to_ptr.vmem [resolvable:$true] %s10_s17 }
   0x2   :  { %13 = dma.vmem_to_smem %s11_s17, 16, %s487_s18, [#allocation4] }
   0x3   :  { %455 = dma.done.wait [#allocation4], 16 }
   0x4   :  { %456 = vsyncadd [#allocation4], 4294967280 }
   0x5   :  { %16 = sfence }
   0x6   :  { %17 = vsyncpa [#allocation7], 0 }
   0x7   :  { %19 = vsyncpa [#allocation7 + $0x1], 0  ;;  %s518_s19 = smov 0   ;;  %s520_s20 = smov 0  }
   0x8   :  { %s522_s21 = smov 0   ;;  %s524_s22 = smov 0  }
   0x9 LB: > { %s539_s0 = sadd.s32 4294967295, %s477_s22   ;;  %s297_s23 = sadd.s32 4294967294, %s477_s22   ;;  %s477_s22 = sphi %s524_s22, %s659_s22   ;;  %s473_s21 = sphi %s522_s21, %s658_s21   ;;  %s469_s20 = sphi %s520_s20, %s657_s20   ;;  %s465_s19 = sphi %s518_s19, %s656_s19  }
   0xa   : > { %s543_s24 = sadd.s32 1, %s477_s22   ;;  %s79_s25 = sadd.s32 1, %s473_s21 }
   0xb   : > { %s76_s26 = ssub.s32 %s477_s22, %s543_s24  ;;  %p89_p0 = scmp.ne.s32.totalorder %s473_s21, %s469_s20 }
   0xc   : > { %p77_p1 = scmp.eq.s32.totalorder %s76_s26, 0  ;;  %p90_p2 = scmp.eq.s32.totalorder %s539_s0, 1 }
   0xd   : > { %p95_p3 = scmp.ne.s32.totalorder %s469_s20, %s465_s19  ;;  %p96_p4 = scmp.eq.s32.totalorder %s297_s23, 1 }
   0xe   : > { %s554_s27 = scalar_select %p77_p1, %s473_s21, %s79_s25  }
   0xf   : > { %p556_p5 = por %p90_p2, %p89_p0  ;;  %p560_p6 = por %p96_p4, %p95_p3 }
  0x10   : > { %p300_p7 = scmp.ge.s32.totalorder %s477_s22, 1  ;;  %p124_p8 = scmp.lt.s32.totalorder %s477_s22, 3 }
  0x12   : > { %p125_p9 = pnand %p300_p7, %p124_p8 }
  0x13   : > { %s648_s30 = sand.u32 (!%p125_p9), 1, %s469_s20   ;;  %p145_p10 = scmp.lt.s32.totalorder (!%p125_p9), %s539_s0, 1 }
  0x14   : > { %128 = sbr.rel (%p125_p9) target bundleno = 208 (0xd0), region = 28  ;;  %s570_s5 = sshll.u32 (!%p125_p9), %s648_s30, 3 }
  0x15   : > { %s580_s13 = smov (!%p125_p9), 0  }
  0x19   : > { %s146_s7 = scalar_select %p145_p10, %s539_s0, 1 }
  0x1b   : > { %s302_s8 = sshll.u32 %s146_s7, 3 }
  0x1c   : > { %s577_s11 = scalar_lea.vmem %s644_s1, %s302_s8 }
  0x1d LB: >> { %s651_s6 = sshll.u32 %s539_s0, 3  ;;  %s159_s16 = scalar_lea.vmem [#allocation2], %s481_s13  ;;  %s481_s13 = sphi %s580_s13, %s155_s13  }
  0x1e   : >> { %s156_s14 = sadd.s32 %s481_s13, %s651_s6  ;;  %s169_s17 = sshll.u32 %s159_s16, 4  ;;  %s170_s17 = int_to_ptr.vmem [resolvable:$true] %s169_s17 }
  0x1f   : >> { %s157_s15 = sld [smem:[#allocation5 + %s156_s14]]  ;;  %s383_s30 = scalar_lea.hbm %s645_s2, 64 }
  0x25   : >> { %s158_s25 = scalar_lea.hbm %s645_s2, %s157_s15 }
  0x26   : >> { %s167_s26 = sshll.u32 %s158_s25, 4  ;;  %s168_s26 = int_to_ptr.hbm [resolvable:$true] %s167_s26 }
  0x27   : >> { %s379_s7 = sshra.s32 %s168_s26, 4  ;;  %s380_s7 = int_to_ptr.hbm [resolvable:$true] %s379_s7 }
  0x28   : >> { %s381_s8 = scalar_lea.hbm %s380_s7, 1  ;;  %p384_p12 = scmp.lt.s32.totalorder %s380_s7, %s645_s2 }
  0x29   : >> { %p382_p11 = scmp.ne.s32.totalorder %s380_s7, %s381_s8  ;;  %p385_p13 = scmp.lt.s32.totalorder %s383_s30, %s381_s8 }
  0x2b   : >> { %p386_p0 = por %p385_p13, %p384_p12 }
  0x2d   : >> { %p387_p1 = pnand %p386_p0, %p382_p11 }
  0x2f   : >> { %390 = shalt.err (!%p387_p1)  }
  0x30   : >> { %s391_s14 = sshra.s32 %s170_s17, 4  ;;  %s488_s16 = smov [#allocation2]   ;;  %s392_s14 = int_to_ptr.vmem [resolvable:$true] %s391_s14 }
  0x31   : >> { %s393_s15 = scalar_lea.vmem %s392_s14, 1  ;;  %s395_s18 = scalar_lea.vmem %s488_s16, 8 }
  0x32   : >> { %p394_p2 = scmp.ne.s32.totalorder %s392_s14, %s393_s15  ;;  %p396_p3 = scmp.lt.s32.totalorder %s392_s14, [#allocation2] }
  0x33   : >> { %p397_p4 = scmp.lt.s32.totalorder %s395_s18, %s393_s15 }
  0x35   : >> { %p398_p7 = por %p397_p4, %p396_p3 }
  0x37   : >> { %p399_p8 = pnand %p398_p7, %p394_p2 }
  0x39   : >> { %402 = shalt.err (!%p399_p8)  }
  0x3a   : >> { %172 = dma.hbm_to_vmem [thread:$0]  %s168_s26, 16, %s170_s17, [#allocation3] }
  0x3b   : >> { %s155_s13 = sadd.s32 1, %s481_s13  }
  0x3c   : >> { %p152_p9 = scmp.ge.s32.totalorder %s155_s13, 8  }
  0x3d   : > { %v173_v0 = vld [vmem:[%s577_s11] sm:$0xff] (%p152_p9)  ;;  %v489_v1 = vmov (%p152_p9), 0   ;;  %s483_s11 = smov (%p152_p9), 0  }
  0x3e   : > { %154 = sbr.rel (!%p152_p9) target bundleno = 29 (0x1d), region = 83  ;;  %366 = vset.pattern.permute.xlu0 (%p152_p9), %v489_v1  ;;  %vm176_vm0 = vcmp.eq.s32.totalorder (%p152_p9), %v173_v0, 2  ;;  %vm175_vm1 = vcmp.eq.s32.totalorder (%p152_p9), %v173_v0, 1  ;;  %v174_v5 = vld [vmem:[%s646_s3] sm:$0x7] (%p152_p9) }
  0x3f   : > { %v177_v2 = vsel (%p152_p9), %vm176_vm0, 1, %v489_v1  ;;  %v185_v3 = vsel (%p152_p9), %vm175_vm1, 1, %v489_v1  ;;  %v182_v6 = vperm.slane (%p152_p9), %v174_v5, 2  ;;  %v183_v7 = vperm.slane (%p152_p9), %v174_v5, 0 }
  0x40   : > { %179 = vperm.xlu0 (%p152_p9), %366, %v177_v2   ;;  %v190_v8 = vperm.slane (%p152_p9), %v174_v5, 1 }
  0x48   : > { %187 = vperm.xlu0 %366, %v185_v3  }
  0xb2   : > { %v180_v4 = vpop.permute.xlu0 %179 }
  0xb3   : > { %vm181_vm2 = vcmp.eq.s32.totalorder %v180_v4, 1 }
  0xb4   : > { %v184_v10 = vsel %vm181_vm2, %v182_v6, %v183_v7 }
  0xba   : > { %v188_v9 = vpop.permute.xlu0 %187 }
  0xbb   : > { %vm189_vm3 = vcmp.eq.s32.totalorder %v188_v9, 1 }
  0xbc   : > { %v191_v11 = vsel %vm189_vm3, %v190_v8, %v184_v10 }
  0xbd LB: >> { %457 = dma.done.wait [#allocation3], 16  ;;  %s485_s11 = sphi %s483_s11, %s197_s11  }
  0xbe   : >> { %458 = vsyncadd [#allocation3], 4294967280  ;;  %s197_s11 = sadd.s32 1, %s485_s11  }
  0xbf   : >> { %p194_p10 = scmp.ge.s32.totalorder %s197_s11, 8  }
  0xc0   : > { %v201_v12 = vld [vmem:[#allocation2] sm:$0xff] (%p194_p10)  ;;  %s652_s12 = sshll.u32 (%p194_p10), %s539_s0, 3  ;;  %s653_s25 = scalar_lea.vmem (%p194_p10), [#allocation6], %s570_s5 }
  0xc1   : > { %196 = sbr.rel (!%p194_p10) target bundleno = 189 (0xbd), region = 94  ;;  %s215_s23 = scalar_lea.hbm (%p194_p10), %s647_s4, %s652_s12  ;;  %v202_v13 = vadd.f32 (%p194_p10), %v201_v12, %v191_v11 }
  0xc2   : > { %s217_s26 = sshll.u32 (%p194_p10), %s653_s25, 4  ;;  %s219_s7 = sshll.u32 (%p194_p10), %s215_s23, 4  ;;  %s218_s26 = int_to_ptr.vmem [resolvable:$true] %s217_s26  ;;  %s220_s7 = int_to_ptr.hbm [resolvable:$true] %s219_s7 }
  0xc3   : > { %s654_s8 = smov (%p194_p10), %s653_s25  ;;  %s655_s9 = sand.u32 (%p194_p10), 1, %s469_s20  }
  0xc4   : > { %203 = vst [vmem:[%s654_s8] sm:$0xff] (%p194_p10), %v202_v13  ;;  %s205_s10 = scalar_lea.sflag (%p194_p10), [#allocation7], %s655_s9  ;;  %s417_s14 = sshra.s32 (%p194_p10), %s220_s7, 4  ;;  %s418_s14 = int_to_ptr.hbm [resolvable:$true] %s417_s14 }
  0xc5   : > { %s419_s0 = scalar_lea.hbm (%p194_p10), %s418_s14, 8  ;;  %s423_s18 = scalar_lea.hbm (%p194_p10), %s647_s4, 16 }
  0xc6   : > { %p420_p11 = scmp.ne.s32.totalorder %s418_s14, %s419_s0  ;;  %p424_p0 = scmp.lt.s32.totalorder %s418_s14, %s647_s4 }
  0xc7   : > { %p425_p1 = scmp.lt.s32.totalorder %s423_s18, %s419_s0 }
  0xc8   : > { %p421_p12 = pnand %p420_p11, %p556_p5 }
  0xc9   : > { %p426_p2 = por %p425_p1, %p424_p0 }
  0xca   : > { %p422_p13 = pneg %p421_p12 }
  0xcc   : > { %p427_p3 = pnand %p426_p2, %p422_p13 }
  0xce   : > { %430 = shalt.err (!%p427_p3)
}
  0xcf   : > { %309 = dma.vmem_to_hbm [thread:$0]  (%p556_p5), %s218_s26, 128, %s220_s7, %s205_s10  }
  0xd0 PF: > { %p315_p4 = scmp.ge.s32.totalorder %s477_s22, 2  ;;  %s231_s5 = sand.u32 1, %s465_s19  }
  0xd1   : > { %s232_s11 = scalar_lea.sflag [#allocation7], %s231_s5 }
  0xd2   : > { %p312_p7 = pnand %p315_p4, %p560_p6 }
  0xd4   : > { %p313_p8 = pneg %p312_p7 }
  0xd6   : > { %460 = dma.done.wait (%p313_p8), %s232_s11, 128  }
  0xd7   : > { %462 = vsyncadd (%p313_p8), %s232_s11, 4294967168  ;;  %p22_p9 = scmp.ge.s32.totalorder %s543_s24, 4   ;;  %s656_s19 = smov %s469_s20 }
  0xd8   : > { %s657_s20 = smov %s473_s21  ;;  %s658_s21 = smov %s554_s27 }
  0xd9   : > { %s659_s22 = smov %s543_s24  ;;  %24 = sbr.rel (!%p22_p9) target bundleno = 9 (0x9), region = 105 }
  0xde   :  { %238 = vsyncpa [#allocation7], 1 }
  0xdf   :  { %240 = vsyncpa [#allocation7 + $0x1], 1 }
  0xe0   :  { %241 = vsyncmov [#allocation3] }
  0xe3   :  { %s242_s22 = vpop.sfrf %241 }
  0xe4   :  { %p308_p5 = scmp.ne.s32.totalorder %s242_s22, 0 }
  0xe6   :  { %246 = shalt.err (%p308_p5)  }

</bundles_post_ra>
